<compile_context>
chip_gen: v5e
topology: v5e:2x2
jax: 0.10.0
libtpu: 0.0.40
codegen_flags: <defaults>
</compile_context>

<pallas_src>
import functools

import jax
import jax.numpy as jnp
from jax.experimental import pallas as pl
from jax.experimental.pallas import tpu as pltpu


# ----------------------------------------------------------------------------
# Kernels
# ----------------------------------------------------------------------------
def _input_projection_kernel(x_ref, w_ref, b_ref, o_ref):
    """One big, hoisted (T*B, Din) @ (Din, 2*PAD) projection + bias."""
    o_ref[...] = (
        jnp.dot(x_ref[...], w_ref[...], preferred_element_type=jnp.float32)
        + b_ref[...]
    ).astype(o_ref.dtype)


def _recurrent_kernel(
    pre_ref,     # (TS, B, 2*PAD) f32   hoisted x-projection (+bias), streamed
    x_ref,       # (TS, B, Din)   f32   raw x for the passthrough blend, streamed
    h0_ref,      # (B, H)         f32   initial hidden state, resident
    u_ref,       # (H, 2*PAD)     compute dtype, fused recurrent weights, resident
    y_ref,       # (TS, B, PAD)   f32   per-step [y_t | h_t | 0], lane-dense
    h_out_ref,   # (B, H)         f32   VMEM-resident carry / final hidden state
    *,
    ts: int,
    din: int,
    hid: int,
    pad: int,
):
    c = pl.program_id(0)

    # Seed the VMEM-resident carry block once (constant index_map keeps it
    # resident across the "arbitrary" time-chunk axis).
    @pl.when(c == 0)
    def _():
        h_out_ref[...] = h0_ref[...]

    u = u_ref[...]                       # resident fused recurrent weights
    b = x_ref.shape[1]
    zpad = pad - din - hid
    zeros_tail = jnp.zeros((b, zpad), jnp.float32) if zpad > 0 else None

    h = h_out_ref[...]                   # (B, H) f32 carried as a value
    # TS is a small static chunk -> fully unrolled straight-line code with
    # constant offsets (no visible loop on the serial critical path).
    for i in range(ts):
        # One small MXU op per step; x-projection is already in pre_ref.
        pre = pre_ref[i] + jnp.dot(
            h.astype(u.dtype), u, preferred_element_type=jnp.float32)

        tanh_blk = jnp.tanh(pre[:, :pad])           # [ y_in | h_in | 0   ]
        sig_blk = jax.nn.sigmoid(pre[:, pad:])      # [ g_y  | g_h  | 0.5 ]

        # prev = [ x | h | 0 ]  (pad lanes blend to 0, harmless)
        if zpad > 0:
            prev = jnp.concatenate([x_ref[i], h, zeros_tail], axis=1)
        else:
            prev = jnp.concatenate([x_ref[i], h], axis=1)

        # Full-width lerp:  out = tanh + sig*(prev - tanh)
        #   cols [0:Din)      -> y_t = g_y*x + (1-g_y)*y_in
        #   cols [Din:Din+H)  -> h_t = g_h*h + (1-g_h)*h_in
        out_blk = tanh_blk + sig_blk * (prev - tanh_blk)

        y_ref[i] = out_blk.astype(y_ref.dtype)      # lane-dense (B, PAD) store
        h = out_blk[:, din:din + hid]               # carried hidden state

    h_out_ref[...] = h                              # once per chunk, not per step


def _single_step_kernel(
    xh_ref,      # (B, PAD)        f32  = [x | h | 0]
    wu_ref,      # (PAD, 2*PAD)    compute dtype = [W_cat ; U_cat ; 0]
    b_ref,       # (1, 2*PAD)      f32
    y_ref,       # (B, PAD)        f32  = [y_t | h_t | 0]
    h_out_ref,   # (B, H)          f32
    *,
    din: int,
    hid: int,
    pad: int,
):
    xh = xh_ref[...]                                 # f32, also used as `prev`
    pre = jnp.dot(xh.astype(wu_ref.dtype), wu_ref[...],
                  preferred_element_type=jnp.float32) + b_ref[...]
    tanh_blk = jnp.tanh(pre[:, :pad])
    sig_blk = jax.nn.sigmoid(pre[:, pad:])
    out_blk = tanh_blk + sig_blk * (xh - tanh_blk)
    y_ref[...] = out_blk.astype(y_ref.dtype)
    h_out_ref[...] = out_blk[:, din:din + hid].astype(h_out_ref.dtype)


# ----------------------------------------------------------------------------
# Host-side parameter packing
# ----------------------------------------------------------------------------
def pack_params(params, input_size, hidden_size):
    """Fuse the 8 weights + 4 biases into lane-aligned operands:
       W_cat (Din, 2*PAD), U_cat (H, 2*PAD), b_cat (1, 2*PAD), all f32.
       Columns [0:PAD) hold the tanh half [y_in | h_in | 0],
       columns [PAD:2*PAD) the sigmoid half [g_y | g_h | 0]."""
    (w_yin, w_hin, w_gy, w_gh,
     u_yin, u_hin, u_gy, u_gh,
     b_yin, b_hin, b_gy, b_gh) = params

    pad = 128 * pl.cdiv(input_size + hidden_size, 128)
    zpad = pad - input_size - hidden_size

    def cat_half(a, b, rows):
        z = jnp.zeros((rows, zpad), jnp.float32)
        return jnp.concatenate([a, b, z], axis=1)

    w_cat = jnp.concatenate(
        [cat_half(w_yin, w_hin, input_size), cat_half(w_gy, w_gh, input_size)],
        axis=1)
    u_cat = jnp.concatenate(
        [cat_half(u_yin, u_hin, hidden_size), cat_half(u_gy, u_gh, hidden_size)],
        axis=1)
    zb = jnp.zeros((zpad,), jnp.float32)
    b_cat = jnp.concatenate([b_yin, b_hin, zb, b_gy, b_gh, zb]).reshape(1, 2 * pad)
    return w_cat, u_cat, b_cat, pad


# ----------------------------------------------------------------------------
# Wrappers
# ----------------------------------------------------------------------------
def _input_projection(xs_f32, w_cat, b_cat, compute_dtype, *, row_tile=512):
    """Hoisted, parallel Pallas matmul: (T*B, Din) @ (Din, 2*PAD) + bias."""
    T, B, Din = xs_f32.shape
    n2 = w_cat.shape[1]
    M = T * B
    x2d = xs_f32.reshape(M, Din).astype(compute_dtype)
    w = w_cat.astype(compute_dtype)
    tm = M if M <= row_tile else row_tile
    grid_m = pl.cdiv(M, tm)

    pre = pl.pallas_call(
        _input_projection_kernel,
        out_shape=jax.ShapeDtypeStruct((M, n2), jnp.float32),
        grid_spec=pltpu.PrefetchScalarGridSpec(
            num_scalar_prefetch=0,
            grid=(grid_m,),
            in_specs=[
                pl.BlockSpec((tm, Din), lambda i: (i, 0)),
                pl.BlockSpec((Din, n2), lambda i: (0, 0)),   # W_cat resident
                pl.BlockSpec((1, n2), lambda i: (0, 0)),     # bias resident
            ],
            out_specs=pl.BlockSpec((tm, n2), lambda i: (i, 0)),
        ),
        compiler_params=pltpu.CompilerParams(
            dimension_semantics=("parallel",)),
    )(x2d, w, b_cat)
    return pre.reshape(T, B, n2)


def intersection_rnn_sequence(xs, h0, params, *, compute_dtype=jnp.float32,
                              max_chunk=8):
    """Run T timesteps of IntersectionRNNCell.

    xs: (T, B, Din)   h0: (B, H)   ->   (ys (T, B, Din) f32, h_T (B, H) f32)
    """
    T, B, Din = xs.shape
    H = h0.shape[1]

    w_cat, u_cat, b_cat, pad = pack_params(params, Din, H)
    xs_f = xs.astype(jnp.float32)
    h0_f = h0.astype(jnp.float32)

    # Phase 1 (parallel): hoisted input projection, one big matmul over T*B rows.
    pre_x = _input_projection(xs_f, w_cat, b_cat, compute_dtype)   # (T,B,2*pad) f32

    # Phase 2 (serial recurrence), TS timesteps per grid step (fully unrolled).
    ts = min(T, max_chunk)
    while T % ts:
        ts -= 1
    grid_t = T // ts

    kernel = functools.partial(_recurrent_kernel, ts=ts, din=Din, hid=H, pad=pad)

    y_pad, h_t = pl.pallas_call(
        kernel,
        out_shape=(
            jax.ShapeDtypeStruct((T, B, pad), jnp.float32),   # [y | h | 0] per step
            jax.ShapeDtypeStruct((B, H), jnp.float32),        # h_T
        ),
        grid_spec=pltpu.PrefetchScalarGridSpec(
            num_scalar_prefetch=0,
            grid=(grid_t,),
            in_specs=[
                pl.BlockSpec((ts, B, 2 * pad), lambda c: (c, 0, 0)),  # pre_x chunk
                pl.BlockSpec((ts, B, Din), lambda c: (c, 0, 0)),      # x chunk (blend)
                pl.BlockSpec((B, H), lambda c: (0, 0)),               # h0 resident
                pl.BlockSpec((H, 2 * pad), lambda c: (0, 0)),         # U_cat resident
            ],
            out_specs=[
                pl.BlockSpec((ts, B, pad), lambda c: (c, 0, 0)),      # lane-dense y
                pl.BlockSpec((B, H), lambda c: (0, 0)),               # h carry / h_T
            ],
        ),
        compiler_params=pltpu.CompilerParams(
            # Time axis carries a dependency through the hidden state.
            dimension_semantics=("arbitrary",)),
    )(pre_x, xs_f, h0_f, u_cat.astype(compute_dtype))

    return y_pad[:, :, :Din], h_t


def intersection_rnn_cell(x, h_prev, params, *, compute_dtype=jnp.float32):
    """Single-step forward (matches the PyTorch module's forward()): one fused
    MXU op  [x | h | 0] @ [W_cat ; U_cat ; 0]."""
    B, Din = x.shape
    H = h_prev.shape[1]
    w_cat, u_cat, b_cat, pad = pack_params(params, Din, H)
    zpad = pad - Din - H

    parts = [x.astype(jnp.float32), h_prev.astype(jnp.float32)]
    if zpad > 0:
        parts.append(jnp.zeros((B, zpad), jnp.float32))
    xh = jnp.concatenate(parts, axis=1)                       # (B, pad)

    wu_parts = [w_cat, u_cat]
    if zpad > 0:
        wu_parts.append(jnp.zeros((zpad, 2 * pad), jnp.float32))
    wu = jnp.concatenate(wu_parts, axis=0).astype(compute_dtype)   # (pad, 2*pad)

    kernel = functools.partial(_single_step_kernel, din=Din, hid=H, pad=pad)
    y_pad, h_t = pl.pallas_call(
        kernel,
        out_shape=(
            jax.ShapeDtypeStruct((B, pad), jnp.float32),
            jax.ShapeDtypeStruct((B, H), jnp.float32),
        ),
        grid_spec=pltpu.PrefetchScalarGridSpec(
            num_scalar_prefetch=0,
            grid=(1,),
            in_specs=[
                pl.BlockSpec((B, pad), lambda i: (0, 0)),
                pl.BlockSpec((pad, 2 * pad), lambda i: (0, 0)),
                pl.BlockSpec((1, 2 * pad), lambda i: (0, 0)),
            ],
            out_specs=[
                pl.BlockSpec((B, pad), lambda i: (0, 0)),
                pl.BlockSpec((B, H), lambda i: (0, 0)),
            ],
        ),
        compiler_params=pltpu.CompilerParams(
            dimension_semantics=("arbitrary",)),
    )(xh, wu, b_cat)
    return y_pad[:, :Din], h_t


# ----------------------------------------------------------------------------
# Parameter init + pure-JAX reference
# ----------------------------------------------------------------------------
def init_params(key, input_size, hidden_size):
    ks = jax.random.split(key, 8)

    def xavier(k, shape):
        fan_in, fan_out = shape
        std = (2.0 / (fan_in + fan_out)) ** 0.5
        return std * jax.random.normal(k, shape, dtype=jnp.float32)

    def orthogonal(k, shape):
        a = jax.random.normal(k, shape, dtype=jnp.float32)
        q, r = jnp.linalg.qr(a if shape[0] >= shape[1] else a.T)
        q = q * jnp.sign(jnp.diag(r))[None, :]
        return q if shape[0] >= shape[1] else q.T

    w_yin = xavier(ks[0], (input_size, input_size))
    w_hin = xavier(ks[1], (input_size, hidden_size))
    w_gy = xavier(ks[2], (input_size, input_size))
    w_gh = xavier(ks[3], (input_size, hidden_size))
    u_yin = orthogonal(ks[4], (hidden_size, input_size))
    u_hin = orthogonal(ks[5], (hidden_size, hidden_size))
    u_gy = orthogonal(ks[6], (hidden_size, input_size))
    u_gh = orthogonal(ks[7], (hidden_size, hidden_size))
    b_yin = jnp.zeros((input_size,), jnp.float32)
    b_hin = jnp.zeros((hidden_size,), jnp.float32)
    b_gy = jnp.zeros((input_size,), jnp.float32)
    b_gh = jnp.zeros((hidden_size,), jnp.float32)
    return (w_yin, w_hin, w_gy, w_gh,
            u_yin, u_hin, u_gy, u_gh,
            b_yin, b_hin, b_gy, b_gh)


def reference_sequence(xs, h0, params):
    (w_yin, w_hin, w_gy, w_gh,
     u_yin, u_hin, u_gy, u_gh,
     b_yin, b_hin, b_gy, b_gh) = params

    def step(h, x):
        y_in = jnp.tanh(x @ w_yin + h @ u_yin + b_yin)
        h_in = jnp.tanh(x @ w_hin + h @ u_hin + b_hin)
        g_y = jax.nn.sigmoid(x @ w_gy + h @ u_gy + b_gy)
        g_h = jax.nn.sigmoid(x @ w_gh + h @ u_gh + b_gh)
        y_t = g_y * x + (g_y - 1.0) * -1.0 * y_in
        h_t = g_h * h + (g_h - 1.0) * -1.0 * h_in
        return h_t, y_t

    h_T, ys = jax.lax.scan(step, h0, xs)
    return ys, h_T


# ----------------------------------------------------------------------------
# Test
# ----------------------------------------------------------------------------
if __name__ == "__main__":
    key = jax.random.PRNGKey(0)
    k_param, k_x, k_h = jax.random.split(key, 3)

    T = 8
    batch = 8
    input_size = 64
    hidden_size = 32

    params = init_params(k_param, input_size, hidden_size)
    xs = jax.random.normal(k_x, (T, batch, input_size), dtype=jnp.float32)
    # NONZERO initial hidden state so the U_* recurrent paths are verified.
    h0 = 0.5 * jax.random.normal(k_h, (batch, hidden_size), dtype=jnp.float32)

    ys_ref, h_ref = reference_sequence(xs, h0, params)

    # --- f32 path -------------------------------------------------------------
    ys_f32, h_f32 = intersection_rnn_sequence(xs, h0, params,
                                              compute_dtype=jnp.float32)
    jax.block_until_ready((ys_f32, h_f32))
    assert jnp.allclose(ys_f32, ys_ref, atol=1e-4, rtol=1e-4)
    assert jnp.allclose(h_f32, h_ref, atol=1e-4, rtol=1e-4)

    # --- bf16 MXU operands, f32 accumulation & blend (v6e / v7x fast path) ----
    ys_bf16, h_bf16 = intersection_rnn_sequence(xs, h0, params,
                                                compute_dtype=jnp.bfloat16)
    jax.block_until_ready((ys_bf16, h_bf16))
    assert jnp.allclose(ys_bf16, ys_ref, atol=1e-1, rtol=1e-1)
    assert jnp.allclose(h_bf16, h_ref, atol=1e-1, rtol=1e-1)

    # --- fused single-step kernel (matches the module's forward()) ------------
    y0, h1 = intersection_rnn_cell(xs[0], h0, params)
    jax.block_until_ready((y0, h1))
    _, h1_ref = reference_sequence(xs[:1], h0, params)
    assert jnp.allclose(y0, ys_ref[0], atol=1e-4, rtol=1e-4)
    assert jnp.allclose(h1, h1_ref, atol=1e-4, rtol=1e-4)

    print("KERNEL_OK")
</pallas_src>

<mosaic_0001>
module attributes {stable_mosaic.version = 11 : i64} {
  func.func @_input_projection_kernel(%arg0: i32, %arg1: memref<64x64xf32, #tpu.memory_space<vmem>>, %arg2: memref<64x256xf32, #tpu.memory_space<vmem>>, %arg3: memref<1x256xf32, #tpu.memory_space<vmem>>, %arg4: memref<64x256xf32, #tpu.memory_space<vmem>>) attributes {dimension_semantics = [#tpu.dimension_semantics<parallel>], iteration_bounds = array<i64: 1>, scalar_prefetch = 0 : i64, scratch_operands = 0 : i64, tpu.core_type = #tpu.core_type<tc>, window_params = [{transform_indices = @transform_0, window_bounds = array<i64: 64, 64>}, {pipeline_mode = #tpu.pipeline_mode<synchronous>, transform_indices = @transform_1, window_bounds = array<i64: 64, 256>}, {pipeline_mode = #tpu.pipeline_mode<synchronous>, transform_indices = @transform_2, window_bounds = array<i64: 1, 256>}, {transform_indices = @transform_3, window_bounds = array<i64: 64, 256>}]} {
    %c0 = arith.constant 0 : index
    %c0_0 = arith.constant 0 : index
    %0 = vector.load %arg1[%c0, %c0_0] : memref<64x64xf32, #tpu.memory_space<vmem>>, vector<64x64xf32>
    %c0_1 = arith.constant 0 : index
    %c0_2 = arith.constant 0 : index
    %1 = vector.load %arg2[%c0_1, %c0_2] : memref<64x256xf32, #tpu.memory_space<vmem>>, vector<64x256xf32>
    %cst = arith.constant dense<0.000000e+00> : vector<64x256xf32>
    %2 = tpu.matmul %0, %1, %cst {dimension_numbers = #tpu.dot_dimension_numbers<[1], [0], [0], [1], [0, 0, 1, 1], [], []>} : vector<64x64xf32>, vector<64x256xf32>, vector<64x256xf32> -> vector<64x256xf32>
    %c0_3 = arith.constant 0 : index
    %c0_4 = arith.constant 0 : index
    %3 = vector.load %arg3[%c0_3, %c0_4] : memref<1x256xf32, #tpu.memory_space<vmem>>, vector<1x256xf32>
    %4 = vector.broadcast %3 : vector<1x256xf32> to vector<64x256xf32>
    %5 = arith.addf %2, %4 : vector<64x256xf32>
    %c0_5 = arith.constant 0 : index
    %c0_6 = arith.constant 0 : index
    %6 = vector.load %arg4[%c0_5, %c0_6] : memref<64x256xf32, #tpu.memory_space<vmem>>, vector<64x256xf32>
    tpu.vector_store %arg4[%c0_5, %c0_6], %5 {strides = array<i32>} : memref<64x256xf32, #tpu.memory_space<vmem>>, vector<64x256xf32>,
    return
  }
  func.func @transform_0(%arg0: i32) -> (i32, i32) {
    %c0_i32 = arith.constant 0 : i32
    %c0_i32_0 = arith.constant 0 : i32
    return %arg0, %c0_i32 : i32, i32
  }
  func.func @transform_1(%arg0: i32) -> (i32, i32) {
    %c0_i32 = arith.constant 0 : i32
    %c0_i32_0 = arith.constant 0 : i32
    %c0_i32_1 = arith.constant 0 : i32
    return %c0_i32, %c0_i32_0 : i32, i32
  }
  func.func @transform_2(%arg0: i32) -> (i32, i32) {
    %c0_i32 = arith.constant 0 : i32
    %c0_i32_0 = arith.constant 0 : i32
    %c0_i32_1 = arith.constant 0 : i32
    return %c0_i32, %c0_i32_0 : i32, i32
  }
  func.func @transform_3(%arg0: i32) -> (i32, i32) {
    %c0_i32 = arith.constant 0 : i32
    %c0_i32_0 = arith.constant 0 : i32
    return %arg0, %c0_i32 : i32, i32
  }
}

</mosaic_0001>

<bundles_post_ra>
// kernel: tpu_custom_call.1
= control target key start
LH: loop header
LB: loop body
LE: loop exit
PB: predicated region body
PF: predicated region fallthrough
CT: control target
= control target key end

     0   :  { %8 = vsyncpa [#allocation3], 0  ;;  %s437_s0 = inlined_call_operand.hbm [shape: f32[64,64], index: 0, kind: input, shape index: {}]   ;;  %s438_s1 = inlined_call_operand.hbm [shape: f32[64,256], index: 1, kind: input, shape index: {}]   ;;  %s439_s2 = inlined_call_operand.hbm [shape: f32[1,256], index: 2, kind: input, shape index: {}]   ;;  %s440_s3 = inlined_call_operand.hbm [shape: f32[64,256], index: 3, kind: output, shape index: {}]  }
   0x1   :  { %9 = vsyncpa [#allocation6], 0  ;;  %s28_s14 = sshll.u32 %s438_s1, 4  ;;  %s29_s14 = int_to_ptr.hbm [resolvable:$true] %s28_s14 }
   0x2   :  { %10 = vsyncpa [#allocation4], 0  ;;  %s375_s15 = smov [#allocation5]   ;;  %s15_s19 = sshll.u32 %s437_s0, 4  ;;  %s16_s19 = int_to_ptr.hbm [resolvable:$true] %s15_s19 }
   0x3   :  { %s30_s16 = sshll.u32 %s375_s15, 4  ;;  %s376_s20 = smov 256   ;;  %s31_s16 = int_to_ptr.vmem [resolvable:$true] %s30_s16 }
   0x4   :  { %s377_s21 = smov 16   ;;  %s378_s22 = smov [#allocation2]  }
   0x5   :  { %36 = dma.hbm_to_vmem [thread:$0]  %s29_s14, 2048, %s31_s16, [#allocation6], %s376_s20, %s376_s20, %s377_s21  }
   0x6   :  { %s17_s23 = sshll.u32 %s378_s22, 4  ;;  %s379_s1 = smov 128   ;;  %s18_s23 = int_to_ptr.vmem [resolvable:$true] %s17_s23 }
   0x7   :  { %s380_s24 = smov 8   ;;  %s42_s27 = sshll.u32 %s439_s2, 4  ;;  %s43_s27 = int_to_ptr.hbm [resolvable:$true] %s42_s27 }
   0x8   :  { %23 = dma.hbm_to_vmem [thread:$0]  %s16_s19, 1024, %s18_s23, [#allocation3], %s379_s1, %s379_s1, %s380_s24  }
   0x9   :  { %s381_s28 = smov [#allocation7]  }
   0xa   :  { %s44_s0 = sshll.u32 %s381_s28, 4  ;;  %s45_s0 = int_to_ptr.vmem [resolvable:$true] %s44_s0 }
   0xb   :  { %47 = dma.hbm_to_vmem [thread:$0]  %s43_s27, 32, %s45_s0, [#allocation6]  }
   0xc   :  { %369 = dma.done.wait [#allocation3], 1024  }
   0xd   :  { %370 = vsyncadd [#allocation3], 4294966272 }
   0xe   :  { %371 = dma.done.wait [#allocation6], 2080  }
   0xf   :  { %372 = vsyncadd [#allocation6], 4294965216  ;;  %v82_v0 = vld [vmem:[#allocation5 + $0x70] sm:$0xff]  ;;  %v83_v1 = vld [vmem:[#allocation5 + $0x78] sm:$0xff]  ;;  %vm90_vm0 = vcmask 523264   ;;  %s382_s2 = smov [#allocation8]  }
  0x10   :  { %v80_v2 = vld [vmem:[#allocation5 + $0x60] sm:$0xff]  ;;  %249 = vmatpush.msra.mxu2 %v82_v0  ;;  %257 = vmatpush.msra.mxu3 %v83_v1  ;;  %v81_v3 = vld [vmem:[#allocation5 + $0x68] sm:$0xff]  ;;  %v78_v4 = vld [vmem:[#allocation5 + $0x50] sm:$0xff]  ;;  %s217_s29 = sshll.u32 %s382_s2, 4  ;;  %s219_s5 = sshll.u32 %s440_s3, 4  ;;  %s218_s29 = int_to_ptr.vmem [resolvable:$true] %s217_s29  ;;  %s220_s5 = int_to_ptr.hbm [resolvable:$true] %s219_s5 }
  0x11   :  { %v79_v5 = vld [vmem:[#allocation5 + $0x58] sm:$0xff]  ;;  %123 = vmatpush.msra.mxu0 %v82_v0  ;;  %164 = vmatpush.msra.mxu1 %v83_v1  ;;  %v76_v6 = vld [vmem:[#allocation5 + $0x40] sm:$0xff]  ;;  %v77_v7 = vld [vmem:[#allocation5 + $0x48] sm:$0xff] }
  0x12   :  { %250 = vmatpush.msra.mxu2 %v80_v2  ;;  %258 = vmatpush.msra.mxu3 %v81_v3  ;;  %v74_v8 = vld [vmem:[#allocation5 + $0x30] sm:$0xff]  ;;  %v75_v9 = vld [vmem:[#allocation5 + $0x38] sm:$0xff]  ;;  %v72_v10 = vld [vmem:[#allocation5 + $0x20] sm:$0xff] }
  0x13   :  { %124 = vmatpush.msra.mxu0 %v80_v2  ;;  %165 = vmatpush.msra.mxu1 %v81_v3  ;;  %v73_v11 = vld [vmem:[#allocation5 + $0x28] sm:$0xff]  ;;  %v70_v12 = vld [vmem:[#allocation5 + $0x10] sm:$0xff]  ;;  %v71_v13 = vld [vmem:[#allocation5 + $0x18] sm:$0xff] }
  0x14   :  { %251 = vmatpush.msra.mxu2 %v78_v4  ;;  %259 = vmatpush.msra.mxu3 %v79_v5  ;;  %v68_v14 = vld [vmem:[#allocation5] sm:$0xff]  ;;  %v69_v15 = vld [vmem:[#allocation5 + $0x8] sm:$0xff]  ;;  %v66_v20 = vld [vmem:[#allocation2 + $0x30] sm:$0xff] }
  0x15   :  { %125 = vmatpush.msra.mxu0 %v78_v4  ;;  %166 = vmatpush.msra.mxu1 %v79_v5  ;;  %v64_v16 = vld [vmem:[#allocation2 + $0x20] sm:$0xff]  ;;  %v65_v18 = vld [vmem:[#allocation2 + $0x28] sm:$0xff]  ;;  %v62_v21 = vld [vmem:[#allocation2 + $0x10] sm:$0xff] }
  0x16   :  { %252 = vmatpush.msra.mxu2 %v76_v6  ;;  %260 = vmatpush.msra.mxu3 %v77_v7  ;;  %v60_v17 = vld [vmem:[#allocation2] sm:$0xff]  ;;  %v61_v19 = vld [vmem:[#allocation2 + $0x8] sm:$0xff]  ;;  %v67_v22 = vld [vmem:[#allocation2 + $0x38] sm:$0xff] }
  0x17   :  { %126 = vmatpush.msra.mxu0 %v76_v6  ;;  %167 = vmatpush.msra.mxu1 %v77_v7  ;;  %v63_v23 = vld [vmem:[#allocation2 + $0x18] sm:$0xff]  ;;  %v84_v24 = vld [vmem:[#allocation7] sm:$0x3] }
  0x18   :  { %253 = vmatpush.msra.mxu2 %v74_v8  ;;  %261 = vmatpush.msra.mxu3 %v75_v9  ;;  %v86_v25 = vperm.slane %v84_v24, 0  ;;  %v87_v26 = vperm.slane %v84_v24, 1 }
  0x19   :  { %127 = vmatpush.msra.mxu0 %v74_v8  ;;  %168 = vmatpush.msra.mxu1 %v75_v9 }
  0x1a   :  { %254 = vmatpush.msra.mxu2 %v72_v10  ;;  %262 = vmatpush.msra.mxu3 %v73_v11 }
  0x1b   :  { %128 = vmatpush.msra.mxu0 %v72_v10  ;;  %169 = vmatpush.msra.mxu1 %v73_v11 }
  0x1c   :  { %255 = vmatpush.msra.mxu2 %v70_v12  ;;  %263 = vmatpush.msra.mxu3 %v71_v13 }
  0x1d   :  { %129 = vmatpush.msra.mxu0 %v70_v12  ;;  %170 = vmatpush.msra.mxu1 %v71_v13 }
  0x1e   :  { %256 = vmatpush.msra.mxu2 %v68_v14  ;;  %264 = vmatpush.msra.mxu3 %v69_v15 }
  0x1f   :  { %237 = vmatmul.msk.f32.vlgmr.msra.gmra.mxu2 %vm90_vm0, %v64_v16  ;;  %245 = vmatmul.msk.f32.vlgmr.msra.gmra.mxu3 %vm90_vm0, %v64_v16 }
  0x20   :  { %130 = vmatpush.msra.mxu0 %v68_v14  ;;  %171 = vmatpush.msra.mxu1 %v69_v15 }
  0x21   :  { %233 = vmatmul.msk.f32.vlgmr.msra.gmra.mxu0 %vm90_vm0, %v60_v17  ;;  %241 = vmatmul.msk.f32.vlgmr.msra.gmra.mxu1 %vm90_vm0, %v60_v17 }
  0x27   :  { %238 = vmatmul.msk.f32.gmra.mxu2 %vm90_vm0, %v65_v18  ;;  %246 = vmatmul.msk.f32.gmra.mxu3 %vm90_vm0, %v65_v18 }
  0x29   :  { %234 = vmatmul.msk.f32.gmra.mxu0 %vm90_vm0, %v61_v19  ;;  %242 = vmatmul.msk.f32.gmra.mxu1 %vm90_vm0, %v61_v19 }
  0x2f   :  { %239 = vmatmul.msk.f32.gmra.mxu2 %vm90_vm0, %v66_v20  ;;  %247 = vmatmul.msk.f32.gmra.mxu3 %vm90_vm0, %v66_v20 }
  0x31   :  { %235 = vmatmul.msk.f32.gmra.mxu0 %vm90_vm0, %v62_v21  ;;  %243 = vmatmul.msk.f32.gmra.mxu1 %vm90_vm0, %v62_v21 }
  0x37   :  { %240 = vmatmul.msk.f32.gmra.mxu2 %vm90_vm0, %v67_v22  ;;  %248 = vmatmul.msk.f32.gmra.mxu3 %vm90_vm0, %v67_v22 }
  0x39   :  { %236 = vmatmul.msk.f32.gmra.mxu0 %vm90_vm0, %v63_v23  ;;  %244 = vmatmul.msk.f32.gmra.mxu1 %vm90_vm0, %v63_v23 }
  0x9e   :  { %v132_v27 = vpop.f32.mrf.mxu0  ;;  %v173_v28 = vpop.f32.mrf.mxu1 }
  0x9f   :  { %v133_v29 = vadd.f32 %v132_v27, %v86_v25  ;;  %v174_v30 = vadd.f32 %v173_v28, %v87_v26 }
  0xa1   :  { %197 = vst [vmem:[#allocation8] sm:$0xff] %v133_v29 }
  0xa2   :  { %v144_v31 = vpop.f32.mrf.mxu2  ;;  %198 = vst [vmem:[#allocation8 + $0x8] sm:$0xff] %v174_v30  ;;  %v185_v32 = vpop.f32.mrf.mxu3 }
  0xa3   :  { %v145_v33 = vadd.f32 %v144_v31, %v86_v25  ;;  %v186_v34 = vadd.f32 %v185_v32, %v87_v26 }
  0xa5   :  { %205 = vst [vmem:[#allocation8 + $0x40] sm:$0xff] %v145_v33 }
  0xa6   :  { %206 = vst [vmem:[#allocation8 + $0x48] sm:$0xff] %v186_v34  ;;  %v135_v35 = vpop.f32.mrf.mxu0  ;;  %v176_v36 = vpop.f32.mrf.mxu1 }
  0xa7   :  { %v136_v37 = vadd.f32 %v135_v35, %v86_v25  ;;  %v177_v38 = vadd.f32 %v176_v36, %v87_v26 }
  0xa9   :  { %199 = vst [vmem:[#allocation8 + $0x10] sm:$0xff] %v136_v37 }
  0xaa   :  { %v147_v39 = vpop.f32.mrf.mxu2  ;;  %200 = vst [vmem:[#allocation8 + $0x18] sm:$0xff] %v177_v38  ;;  %v188_v40 = vpop.f32.mrf.mxu3 }
  0xab   :  { %v148_v41 = vadd.f32 %v147_v39, %v86_v25  ;;  %v189_v42 = vadd.f32 %v188_v40, %v87_v26 }
  0xad   :  { %207 = vst [vmem:[#allocation8 + $0x50] sm:$0xff] %v148_v41 }
  0xae   :  { %208 = vst [vmem:[#allocation8 + $0x58] sm:$0xff] %v189_v42  ;;  %v138_v43 = vpop.f32.mrf.mxu0  ;;  %v179_v44 = vpop.f32.mrf.mxu1 }
  0xaf   :  { %v139_v45 = vadd.f32 %v138_v43, %v86_v25  ;;  %v180_v46 = vadd.f32 %v179_v44, %v87_v26 }
  0xb1   :  { %201 = vst [vmem:[#allocation8 + $0x20] sm:$0xff] %v139_v45 }
  0xb2   :  { %v150_v47 = vpop.f32.mrf.mxu2  ;;  %202 = vst [vmem:[#allocation8 + $0x28] sm:$0xff] %v180_v46  ;;  %v191_v48 = vpop.f32.mrf.mxu3 }
  0xb3   :  { %v151_v49 = vadd.f32 %v150_v47, %v86_v25  ;;  %v192_v50 = vadd.f32 %v191_v48, %v87_v26 }
  0xb5   :  { %209 = vst [vmem:[#allocation8 + $0x60] sm:$0xff] %v151_v49 }
  0xb6   :  { %210 = vst [vmem:[#allocation8 + $0x68] sm:$0xff] %v192_v50  ;;  %v141_v51 = vpop.f32.mrf.mxu0  ;;  %v182_v52 = vpop.f32.mrf.mxu1 }
  0xb7   :  { %v142_v53 = vadd.f32 %v141_v51, %v86_v25  ;;  %v183_v54 = vadd.f32 %v182_v52, %v87_v26 }
  0xb9   :  { %203 = vst [vmem:[#allocation8 + $0x30] sm:$0xff] %v142_v53 }
  0xba   :  { %v153_v55 = vpop.f32.mrf.mxu2  ;;  %204 = vst [vmem:[#allocation8 + $0x38] sm:$0xff] %v183_v54  ;;  %v194_v56 = vpop.f32.mrf.mxu3 }
  0xbb   :  { %v154_v57 = vadd.f32 %v153_v55, %v86_v25  ;;  %v195_v58 = vadd.f32 %v194_v56, %v87_v26 }
  0xbd   :  { %211 = vst [vmem:[#allocation8 + $0x70] sm:$0xff] %v154_v57 }
  0xbe   :  { %212 = vst [vmem:[#allocation8 + $0x78] sm:$0xff] %v195_v58 }
  0xbf   :  { %225 = dma.vmem_to_hbm [thread:$0]  %s218_s29, 2048, %s220_s5, [#allocation4], %s376_s20, %s376_s20, %s377_s21  }
  0xc0   :  { %373 = dma.done.wait [#allocation4], 2048  }
  0xc1   :  { %374 = vsyncadd [#allocation4], 4294965248 }
  0xc2   :  { %230 = vsyncpa [#allocation3], 1 }
  0xc3   :  { %231 = vsyncpa [#allocation6], 1 }
  0xc4   :  { %232 = vsyncpa [#allocation4], 1 }

</bundles_post_ra>
